<compile_context>
chip_gen: v7x
topology: tpu7x:2x2x1
jax: 0.10.0
libtpu: 0.0.40
codegen_flags: <defaults>
</compile_context>

<pallas_src>
import jax
import jax.numpy as jnp
from jax.experimental import pallas as pl
from jax.experimental.pallas import tpu as pltpu

H = 768        # BERT hidden size (fc = nn.Linear(768, output_size))
NOUT = 10      # output_size implied by torch.randn(B, 10) / zeros_like
NPAD = 128     # lane-dense padded fc width (cols NOUT..127 are exact zeros)
MAX_BT = 512   # batch-rows-per-step cap: amortizes step overhead, fits v5e VMEM


def _round_up(x, m):
    return (x + m - 1) // m * m


def _choose_batch_tile(b):
    """Batch rows per grid step (multiple of 8).

    Large tiles amortize the ~0.35 us fixed per-grid-step overhead (the kernel
    is HBM-stream bound).  Capped at MAX_BT=512 so double-buffered bf16 input
    + f32 output + resident weight stays ~2.6 MiB (under v5e's 16 MiB default
    scoped VMEM, v7x's 64 MiB physical).  Moderate/large batches are split
    into >= 2 grid steps so the 'parallel' axis keeps both TensorCores busy
    (megacore / v7x)."""
    b8 = _round_up(max(b, 1), 8)
    if b8 <= 256:
        return b8                                  # single (possibly ragged) block
    half = _round_up(pl.cdiv(b8, 2), 8)            # >= 2 grid steps
    return min(MAX_BT, half)


# ----------------------------- Pallas kernel --------------------------------
def _fc_tail_kernel(h_ref, w_ref, b_ref, o_ref):
    """Per batch tile: fc(h) gated on nonzero row-sum, then row-normalized.

    h_ref : (BT, H)    bf16  last-position hidden states
    w_ref : (H, NPAD)  bf16  fc weight, zero-padded past col NOUT
    b_ref : (1, NPAD)  f32   fc bias,   zero-padded past col NOUT
    o_ref : (BT, NPAD) f32
    """
    h = h_ref[...]                                            # (BT, H) bf16
    # Gate: f32 accumulation over the bf16-quantized activations
    # (matches torch.sum up to bf16 quantization of the activations).
    row_sum = jnp.sum(h.astype(jnp.float32), axis=-1, keepdims=True)  # (BT, 1)

    # bf16 x bf16 MXU matmul with f32 accumulation; bias add in f32.
    logits = jnp.dot(h, w_ref[...],
                     preferred_element_type=jnp.float32) + b_ref[...]

    # tensor_array[non_zero_indices] = fc(...);  rows with zero sum stay 0.
    gated = jnp.where(row_sum != 0.0, logits, 0.0)            # (BT, NPAD)

    # Row normalization: pad columns are exact zeros, so summing all 128 lanes
    # equals summing the true 10 outputs.  Divide via the EUP reciprocal
    # (~2^-12 rel. error; 0-sum rows -> 0*inf = NaN, same as torch 0/0).
    denom = jnp.sum(gated, axis=-1, keepdims=True)            # (BT, 1)
    o_ref[...] = gated * pl.reciprocal(denom, approx=True)


def bert_without_layer_tail(last_hidden_state_bf16, wfc_bf16, bfc_f32):
    """Forward tail of BertWithoutLayer after self.bert.

    last_hidden_state_bf16: (B, L, H) bf16 encoder output.
    wfc_bf16: (H, NPAD) bf16 padded fc weight.  bfc_f32: (1, NPAD) f32 bias.
    Returns (B, NOUT) f32.
    """
    B, L, Hdim = last_hidden_state_bf16.shape
    assert Hdim == H
    assert wfc_bf16.shape == (Hdim, NPAD) and wfc_bf16.dtype == jnp.bfloat16
    assert bfc_f32.shape == (1, NPAD)

    # Free (metadata-only) flatten of the trailing dims.  The last position's
    # hidden state is then the lane-aligned column window [(L-1)*H, L*H), which
    # the input BlockSpec DMAs directly from HBM — no wrapper-side slice pass.
    h_flat = last_hidden_state_bf16.reshape(B, L * Hdim)

    bt = _choose_batch_tile(B)
    rows = B
    if B < bt:
        # Micro-batch edge case only (B < 8): pad to one sublane group.
        # Padded rows gate to 0 -> 0 * rcp(0) = NaN; sliced off below.
        h_flat = jnp.pad(h_flat, ((0, bt - B), (0, 0)))
        rows = bt
    # For rows not a multiple of bt, the ragged last block is masked by Pallas
    # (OOB reads unspecified, OOB writes dropped); garbage rows never leave the
    # [:B] slice and every op in the kernel is per-row.
    grid = (pl.cdiv(rows, bt),)

    out = pl.pallas_call(
        _fc_tail_kernel,
        out_shape=jax.ShapeDtypeStruct((rows, NPAD), jnp.float32),
        grid=grid,
        in_specs=[
            # (bt, H) bf16 window at column block L-1 == last sequence position.
            pl.BlockSpec((bt, Hdim), lambda i: (i, L - 1)),
            pl.BlockSpec((Hdim, NPAD), lambda i: (0, 0)),   # resident bf16 W
            pl.BlockSpec((1, NPAD), lambda i: (0, 0)),      # resident f32 bias
        ],
        out_specs=pl.BlockSpec((bt, NPAD), lambda i: (i, 0)),
        compiler_params=pltpu.CompilerParams(
            dimension_semantics=("parallel",),              # batch is parallel
        ),
    )(h_flat, wfc_bf16, bfc_f32)

    return out[:B, :NOUT]


# ------------------------ reference (plain JAX, literal loop) ----------------
def _reference(last_hidden_state_bf16, wfc_bf16, bfc_f32):
    """Literal translation of the PyTorch forward (loop overwrites each step).
    Uses the same bf16-quantized weight/activation values as the kernel."""
    B, L, _ = last_hidden_state_bf16.shape
    w = wfc_bf16.astype(jnp.float32)[:, :NOUT]
    bias = bfc_f32[0, :NOUT]
    dense_tensor_soft = jnp.zeros((B, NOUT), jnp.float32)
    for i in range(L):
        dense = last_hidden_state_bf16[:, i, :].astype(jnp.float32)
        s = jnp.sum(dense, axis=1, keepdims=True)
        fc_out = dense @ w + bias
        dense_tensor_soft = jnp.where(s != 0.0, fc_out, 0.0)
    denom = jnp.sum(dense_tensor_soft, axis=1, keepdims=True)
    return dense_tensor_soft / denom


# ------------------------ synthetic "bert" stand-in --------------------------
def synthetic_bert_last_hidden_state(input_ids, attention_mask,
                                     word_emb, pos_emb, g, b):
    # TODO(synk): stands in for the frozen pretrained HF BERT encoder
    # (self.bert); deterministic embedding lookup + LayerNorm of the right shape.
    del attention_mask  # the stand-in has no attention; real BERT would use it
    x = word_emb[input_ids] + pos_emb[None, : input_ids.shape[1], :]
    mu = jnp.mean(x, axis=-1, keepdims=True)
    var = jnp.mean((x - mu) ** 2, axis=-1, keepdims=True)
    h = (x - mu) * jax.lax.rsqrt(var + 1e-12) * g + b         # (B, L, H) f32
    # Cast once in the producer: the kernel streams the activation as bf16.
    return h.astype(jnp.bfloat16)


if __name__ == "__main__":
    B, L, VOCAB = 16, 8, 64

    key = jax.random.PRNGKey(0)
    ks = jax.random.split(key, 8)

    # Synthetic bert embedding parameters (non-trivial LN gamma/beta so that
    # per-row hidden sums are robustly nonzero, as with a real checkpoint).
    word_emb = 0.02 * jax.random.normal(ks[0], (VOCAB, H), jnp.float32)
    pos_emb = 0.02 * jax.random.normal(ks[1], (L, H), jnp.float32)
    ln_g = 1.0 + 0.1 * jax.random.normal(ks[2], (H,), jnp.float32)
    ln_b = 0.02 + 0.05 * jax.random.normal(ks[3], (H,), jnp.float32)

    # fc (768 -> 10) parameters, padded to a lane-dense width of 128.
    wfc = 0.01 * jax.random.normal(ks[4], (H, NOUT), jnp.float32)
    bfc = 0.5 + 0.02 * jax.random.normal(ks[5], (NOUT,), jnp.float32)
    wfc_p = (jnp.zeros((H, NPAD), jnp.float32)
             .at[:, :NOUT].set(wfc).astype(jnp.bfloat16))
    bfc_p = jnp.zeros((1, NPAD), jnp.float32).at[0, :NOUT].set(bfc)

    # Example inputs: all rows valid except row 1 with trailing (id=0, mask=0) pad.
    input_ids = jax.random.randint(ks[6], (B, L), 1, VOCAB).astype(jnp.int32)
    attention_mask = jnp.ones((B, L), jnp.int32)
    input_ids = input_ids.at[1, L - 3:].set(0)
    attention_mask = attention_mask.at[1, L - 3:].set(0)

    last_hidden_state = synthetic_bert_last_hidden_state(
        input_ids, attention_mask, word_emb, pos_emb, ln_g, ln_b)  # (B, L, H) bf16

    out = bert_without_layer_tail(last_hidden_state, wfc_p, bfc_p)
    out = jax.block_until_ready(out)

    ref = _reference(last_hidden_state, wfc_p, bfc_p)
    assert out.shape == (B, NOUT)
    assert jnp.allclose(out, ref, atol=1e-2, rtol=1e-2), (out, ref)

    print("KERNEL_OK")
</pallas_src>

<mosaic_0001>
module attributes {stable_mosaic.version = 11 : i64} {
  func.func @_fc_tail_kernel(%arg0: i32, %arg1: memref<16x768xbf16, #tpu.memory_space<vmem>>, %arg2: memref<768x128xbf16, #tpu.memory_space<vmem>>, %arg3: memref<1x128xf32, #tpu.memory_space<vmem>>, %arg4: memref<16x128xf32, #tpu.memory_space<vmem>>) attributes {dimension_semantics = [#tpu.dimension_semantics<parallel>], iteration_bounds = array<i64: 1>, scalar_prefetch = 0 : i64, scratch_operands = 0 : i64, tpu.core_type = #tpu.core_type<tc>, window_params = [{transform_indices = @transform_0, window_bounds = array<i64: 16, 768>}, {pipeline_mode = #tpu.pipeline_mode<synchronous>, transform_indices = @transform_1, window_bounds = array<i64: 768, 128>}, {pipeline_mode = #tpu.pipeline_mode<synchronous>, transform_indices = @transform_2, window_bounds = array<i64: 1, 128>}, {transform_indices = @transform_3, window_bounds = array<i64: 16, 128>}]} {
    %c0 = arith.constant 0 : index
    %c0_0 = arith.constant 0 : index
    %0 = vector.load %arg1[%c0, %c0_0] : memref<16x768xbf16, #tpu.memory_space<vmem>>, vector<16x768xbf16>
    %1 = arith.extf %0 : vector<16x768xbf16> to vector<16x768xf32>
    %cst = arith.constant dense<0.000000e+00> : vector<16xf32>
    %2 = vector.multi_reduction <add>, %1, %cst [1] : vector<16x768xf32> to vector<16xf32>
    %3 = vector.shape_cast %2 : vector<16xf32> to vector<16x1xf32>
    %c0_1 = arith.constant 0 : index
    %c0_2 = arith.constant 0 : index
    %4 = vector.load %arg2[%c0_1, %c0_2] : memref<768x128xbf16, #tpu.memory_space<vmem>>, vector<768x128xbf16>
    %cst_3 = arith.constant dense<0.000000e+00> : vector<16x128xf32>
    %5 = tpu.matmul %0, %4, %cst_3 {dimension_numbers = #tpu.dot_dimension_numbers<[1], [0], [0], [1], [0, 0, 1, 1], [], []>} : vector<16x768xbf16>, vector<768x128xbf16>, vector<16x128xf32> -> vector<16x128xf32>
    %c0_4 = arith.constant 0 : index
    %c0_5 = arith.constant 0 : index
    %6 = vector.load %arg3[%c0_4, %c0_5] : memref<1x128xf32, #tpu.memory_space<vmem>>, vector<1x128xf32>
    %7 = vector.broadcast %6 : vector<1x128xf32> to vector<16x128xf32>
    %8 = arith.addf %5, %7 : vector<16x128xf32>
    %cst_6 = arith.constant 0.000000e+00 : f32
    %9 = vector.broadcast %cst_6 : f32 to vector<16x1xf32>
    %10 = arith.cmpf one, %3, %9 : vector<16x1xf32>
    %cst_7 = arith.constant 0.000000e+00 : f32
    %11 = vector.shape_cast %10 : vector<16x1xi1> to vector<16x1xi1>
    %12 = vector.broadcast %11 : vector<16x1xi1> to vector<16x128xi1>
    %13 = vector.broadcast %cst_7 : f32 to vector<16x128xf32>
    %14 = arith.select %12, %8, %13 : vector<16x128xi1>, vector<16x128xf32>
    %cst_8 = arith.constant dense<0.000000e+00> : vector<16xf32>
    %15 = vector.multi_reduction <add>, %14, %cst_8 [1] : vector<16x128xf32> to vector<16xf32>
    %16 = vector.shape_cast %15 : vector<16xf32> to vector<16x1xf32>
    %17 = tpu.reciprocal %16 {approx = true} : vector<16x1xf32> -> vector<16x1xf32>
    %18 = vector.broadcast %17 : vector<16x1xf32> to vector<16x128xf32>
    %19 = arith.mulf %14, %18 : vector<16x128xf32>
    %c0_9 = arith.constant 0 : index
    %c0_10 = arith.constant 0 : index
    %20 = vector.load %arg4[%c0_9, %c0_10] : memref<16x128xf32, #tpu.memory_space<vmem>>, vector<16x128xf32>
    tpu.vector_store %arg4[%c0_9, %c0_10], %19 {strides = array<i32>} : memref<16x128xf32, #tpu.memory_space<vmem>>, vector<16x128xf32>,
    return
  }
  func.func @transform_0(%arg0: i32) -> (i32, i32) {
    %c7_i32 = arith.constant 7 : i32
    %c0_i32 = arith.constant 0 : i32
    return %arg0, %c7_i32 : i32, i32
  }
  func.func @transform_1(%arg0: i32) -> (i32, i32) {
    %c0_i32 = arith.constant 0 : i32
    %c0_i32_0 = arith.constant 0 : i32
    %c0_i32_1 = arith.constant 0 : i32
    return %c0_i32, %c0_i32_0 : i32, i32
  }
  func.func @transform_2(%arg0: i32) -> (i32, i32) {
    %c0_i32 = arith.constant 0 : i32
    %c0_i32_0 = arith.constant 0 : i32
    %c0_i32_1 = arith.constant 0 : i32
    return %c0_i32, %c0_i32_0 : i32, i32
  }
  func.func @transform_3(%arg0: i32) -> (i32, i32) {
    %c0_i32 = arith.constant 0 : i32
    %c0_i32_0 = arith.constant 0 : i32
    return %arg0, %c0_i32 : i32, i32
  }
}

</mosaic_0001>

<bundles_post_ra>
// kernel: tpu_custom_call.1
= control target key start
LH: loop header
LB: loop body
LE: loop exit
PB: predicated region body
PF: predicated region fallthrough
CT: control target
= control target key end

     0   :  { %8 = vsyncpa [#allocation3], 0  ;;  %s990_s0 = inlined_call_operand.hbm [shape: bf16[16,6144], index: 0, kind: input, shape index: {}]   ;;  %s991_s1 = inlined_call_operand.hbm [shape: bf16[768,128], index: 1, kind: input, shape index: {}]   ;;  %s992_s2 = inlined_call_operand.vmem [shape: f32[1,128], index: 2, kind: input, shape index: {}]   ;;  %s993_s3 = inlined_call_operand.hbm [shape: f32[16,128], index: 3, kind: output, shape index: {}]  }
   0x1   :  { %9 = vsyncpa [#allocation6], 0 }
   0x2   :  { %10 = vsyncpa [#allocation4], 0  ;;  %s16_s14 = scalar_lea.hbm %s990_s0, 2688  ;;  %s921_s15 = smov [#allocation2]  }
   0x3   :  { %s17_s16 = sshll.u32 %s921_s15, 4  ;;  %s870_s19 = scalar_lea.hbm %s990_s0, 3456  ;;  %s18_s16 = int_to_ptr.vmem [resolvable:$true] %s17_s16 }
   0x4   :  { %p847_p0 = scmp.ne.s32.totalorder %s16_s14, %s870_s19  ;;  %s848_s22 = scalar_lea.hbm %s990_s0, 6144 }
   0x5   :  { %p849_p1 = scmp.lt.u32.totalorder %s16_s14, %s990_s0  ;;  %p850_p2 = scmp.lt.u32.totalorder %s848_s22, %s870_s19 }
   0x6   :  { %p852_p4 = scmp.lt.u32.totalorder %s870_s19, %s16_s14 }
   0x7   :  { %p851_p3 = por %p850_p2, %p849_p1 }
   0x9   :  { %p853_p5 = por %p852_p4, %p851_p3 }
   0xb   :  { %p854_p6 = pnand %p853_p5, %p847_p0 }
   0xd   :  { %857 = shalt.err (!%p854_p6)
}
   0xe   :  { %s858_s25 = scalar_lea.vmem %s18_s16, 768  ;;  %p863_p8 = scmp.lt.s32.totalorder %s18_s16, %s18_s16 }
   0xf   :  { %p859_p7 = scmp.ne.s32.totalorder %s18_s16, %s858_s25  ;;  %p864_p9 = scmp.lt.s32.totalorder %s858_s25, %s858_s25 }
  0x11   :  { %p865_p10 = por %p864_p9, %p863_p8 }
  0x13   :  { %p866_p11 = pnand %p865_p10, %p859_p7 }
  0x15   :  { %869 = shalt.err (!%p866_p11)
}
  0x16   :  { %s922_s26 = smov 3072   ;;  %s923_s27 = smov 384  }
  0x17   :  { %s924_s28 = smov 24   ;;  %s925_s29 = smov [#allocation5]  }
  0x18   :  { %23 = dma.hbm_to_vmem [thread:$0]  %s16_s14, 768, %s18_s16, [#allocation3], %s922_s26, %s923_s27, %s924_s28  }
  0x19   :  { %s29_s30 = sshll.u32 %s925_s29, 4  ;;  %s871_s5 = scalar_lea.hbm %s991_s1, 6144  ;;  %s30_s30 = int_to_ptr.vmem [resolvable:$true] %s29_s30 }
  0x1a   :  { %p872_p12 = scmp.ne.s32.totalorder %s991_s1, %s871_s5  ;;  %p875_p13 = scmp.lt.u32.totalorder %s871_s5, %s991_s1 }
  0x1c   :  { %p877_p0 = pnand %p875_p13, %p872_p12 }
  0x1e   :  { %880 = shalt.err (!%p877_p0)
}
  0x1f   :  { %s881_s10 = scalar_lea.vmem %s30_s30, 6144  ;;  %p886_p2 = scmp.lt.s32.totalorder %s30_s30, %s30_s30 }
  0x20   :  { %p882_p1 = scmp.ne.s32.totalorder %s30_s30, %s881_s10  ;;  %p887_p3 = scmp.lt.s32.totalorder %s881_s10, %s881_s10 }
  0x22   :  { %p888_p4 = por %p887_p3, %p886_p2 }
  0x24   :  { %p889_p5 = pnand %p888_p4, %p882_p1 }
  0x26   :  { %892 = shalt.err (!%p889_p5)
}
  0x27   :  { %s926_s11 = smov 64   ;;  %s927_s12 = smov 4  }
  0x28   :  { %35 = dma.hbm_to_vmem [thread:$0]  %s991_s1, 6144, %s30_s30, [#allocation6], %s926_s11, %s926_s11, %s927_s12  }
  0x29   :  { %915 = dma.done.wait [#allocation3], 768  }
  0x2a   :  { %916 = vsyncadd [#allocation3], 4294966528 }
  0x2b   :  { %917 = dma.done.wait [#allocation6], 6144  }
  0x2c   :  { %918 = vsyncadd [#allocation6], 4294961152  ;;  %v788_v0 = vld [vmem:[#allocation5 + $0x40] sm:$0xff]   ;;  %v792_v4 = vld [vmem:[#allocation5 + $0x48] sm:$0xff]  }
  0x2d   :  { %v789_v1 = vld [vmem:[#allocation5] sm:$0xff]   ;;  %712 = vmatprep.subr.bf16.mxu0 %v788_v0  ;;  %v793_v5 = vld [vmem:[#allocation5 + $0x8] sm:$0xff]   ;;  %v796_v8 = vld [vmem:[#allocation5 + $0x50] sm:$0xff]  }
  0x2e   :  { %v790_v2 = vld [vmem:[#allocation5 + $0xc0] sm:$0xff]   ;;  %713 = vmatpush3.bf16.msra.mxu0 %v789_v1  ;;  %v794_v6 = vld [vmem:[#allocation5 + $0xc8] sm:$0xff]   ;;  %v797_v9 = vld [vmem:[#allocation5 + $0x10] sm:$0xff]  }
  0x2f   :  { %v791_v3 = vld [vmem:[#allocation5 + $0x80] sm:$0xff]   ;;  %734 = vmatprep.subr.bf16.mxu1 %v790_v2  ;;  %714 = vmatprep.subr.bf16.mxu0 %v792_v4  ;;  %v795_v7 = vld [vmem:[#allocation5 + $0x88] sm:$0xff]   ;;  %v798_v10 = vld [vmem:[#allocation5 + $0xd0] sm:$0xff]  }
  0x30   :  { %735 = vmatpush3.bf16.msra.mxu1 %v791_v3  ;;  %v799_v11 = vld [vmem:[#allocation5 + $0x90] sm:$0xff]   ;;  %v800_v12 = vld [vmem:[#allocation5 + $0x58] sm:$0xff]   ;;  %v804_v16 = vld [vmem:[#allocation5 + $0x60] sm:$0xff]  }
  0x31   :  { %736 = vmatprep.subr.bf16.mxu1 %v794_v6  ;;  %v801_v13 = vld [vmem:[#allocation5 + $0x18] sm:$0xff]   ;;  %v805_v17 = vld [vmem:[#allocation5 + $0x20] sm:$0xff]   ;;  %v808_v20 = vld [vmem:[#allocation5 + $0x68] sm:$0xff]  }
  0x32   :  { %715 = vmatpush3.bf16.msra.mxu0 %v793_v5  ;;  %v802_v14 = vld [vmem:[#allocation5 + $0xd8] sm:$0xff]   ;;  %v806_v18 = vld [vmem:[#allocation5 + $0xe0] sm:$0xff]   ;;  %v809_v21 = vld [vmem:[#allocation5 + $0x28] sm:$0xff]  }
  0x33   :  { %716 = vmatprep.subr.bf16.mxu0 %v796_v8  ;;  %v803_v15 = vld [vmem:[#allocation5 + $0x98] sm:$0xff]   ;;  %v807_v19 = vld [vmem:[#allocation5 + $0xa0] sm:$0xff]   ;;  %v810_v22 = vld [vmem:[#allocation5 + $0xe8] sm:$0xff]  }
  0x34   :  { %737 = vmatpush3.bf16.msra.mxu1 %v795_v7  ;;  %v811_v23 = vld [vmem:[#allocation5 + $0xa8] sm:$0xff]   ;;  %v812_v24 = vld [vmem:[#allocation5 + $0x70] sm:$0xff]   ;;  %v816_v28 = vld [vmem:[#allocation5 + $0x78] sm:$0xff]  }
  0x35   :  { %738 = vmatprep.subr.bf16.mxu1 %v798_v10  ;;  %v813_v25 = vld [vmem:[#allocation5 + $0x30] sm:$0xff]   ;;  %v817_v29 = vld [vmem:[#allocation5 + $0x38] sm:$0xff]   ;;  %v48_v32 = vld [vmem:[#allocation2 + $0x18] sm:$0xff] }
  0x36   :  { %717 = vmatpush3.bf16.msra.mxu0 %v797_v9  ;;  %v814_v26 = vld [vmem:[#allocation5 + $0xf0] sm:$0xff]   ;;  %v818_v30 = vld [vmem:[#allocation5 + $0xf8] sm:$0xff]   ;;  %v822_v36 = vld [vmem:[#allocation5 + $0x140] sm:$0xff]   ;;  %v57_v45 = vunpack.c.l.bf16 %v48_v32  ;;  %v58_v46 = vunpack.c.h.bf16 %v48_v32 }
  0x37   :  { %718 = vmatprep.subr.bf16.mxu0 %v800_v12  ;;  %v815_v27 = vld [vmem:[#allocation5 + $0xb0] sm:$0xff]   ;;  %v820_v33 = vld [vmem:[#allocation5 + $0xb8] sm:$0xff]   ;;  %v824_v40 = vld [vmem:[#allocation5 + $0x100] sm:$0xff]  }
  0x38   :  { %739 = vmatpush3.bf16.msra.mxu1 %v799_v11  ;;  %v45_v31 = vld [vmem:[#allocation2] sm:$0xff]  ;;  %v46_v37 = vld [vmem:[#allocation2 + $0x8] sm:$0xff]  ;;  %v826_v44 = vld [vmem:[#allocation5 + $0x148] sm:$0xff]   ;;  %v70_v53 = vadd.f32 %v58_v46, %v57_v45 }
  0x39   :  { %740 = vmatprep.subr.bf16.mxu1 %v802_v14  ;;  %v659_v34 = vcombine.high %v45_v31, %v48_v32  ;;  %v658_v35 = vcombine.low %v45_v31, %v48_v32  ;;  %v49_v38 = vld [vmem:[#allocation2 + $0x20] sm:$0xff]  ;;  %v51_v42 = vunpack.c.l.bf16 %v45_v31  ;;  %v52_v43 = vunpack.c.h.bf16 %v45_v31  ;;  %v827_v47 = vld [vmem:[#allocation5 + $0x108] sm:$0xff]   ;;  %v830_v54 = vld [vmem:[#allocation5 + $0x158] sm:$0xff]  }
  0x3a   :  { %719 = vmatpush3.bf16.msra.mxu0 %v801_v13  ;;  %v661_v39 = vcombine.high %v46_v37, %v49_v38  ;;  %v660_v41 = vcombine.low %v46_v37, %v49_v38  ;;  %v828_v48 = vld [vmem:[#allocation5 + $0x150] sm:$0xff]   ;;  %v53_v49 = vunpack.c.l.bf16 %v46_v37  ;;  %v59_v51 = vunpack.c.l.bf16 %v49_v38  ;;  %v831_v57 = vld [vmem:[#allocation5 + $0x118] sm:$0xff]   ;;  %v832_v60 = vld [vmem:[#allocation5 + $0x160] sm:$0xff]  }
  0x3b   :  { %720 = vmatprep.subr.bf16.mxu0 %v804_v16  ;;  %530 = vmatprep.mubr.bf16.mxu0 %v659_v34  ;;  %v63_v50 = vadd.f32 %v52_v43, %v51_v42  ;;  %v829_v52 = vld [vmem:[#allocation5 + $0x110] sm:$0xff]   ;;  %v54_v55 = vunpack.c.h.bf16 %v46_v37  ;;  %v60_v58 = vunpack.c.h.bf16 %v49_v38  ;;  %v833_v62 = vld [vmem:[#allocation5 + $0x120] sm:$0xff]   ;;  %v50_v0 = vld [vmem:[#allocation2 + $0x28] sm:$0xff] }
  0x3c   :  { %741 = vmatpush3.bf16.msra.mxu1 %v803_v15  ;;  %571 = vmatprep.mubr.bf16.mxu1 %v661_v39  ;;  %v71_v59 = vadd.f32 %v70_v53, %v59_v51  ;;  %v47_v63 = vld [vmem:[#allocation2 + $0x10] sm:$0xff]  ;;  %v834_v2 = vld [vmem:[#allocation5 + $0x168] sm:$0xff]   ;;  %v61_v6 = vunpack.c.l.bf16 %v50_v0  ;;  %v62_v8 = vunpack.c.h.bf16 %v50_v0  ;;  %v836_v11 = vld [vmem:[#allocation5 + $0x170] sm:$0xff]  }
  0x3d   :  { %742 = vmatprep.subr.bf16.mxu1 %v806_v18  ;;  %v64_v56 = vadd.f32 %v63_v50, %v53_v49  ;;  %v663_v3 = vcombine.high %v47_v63, %v50_v0  ;;  %v55_v4 = vunpack.c.l.bf16 %v47_v63  ;;  %v56_v5 = vunpack.c.h.bf16 %v47_v63  ;;  %v835_v9 = vld [vmem:[#allocation5 + $0x128] sm:$0xff]   ;;  %v837_v14 = vld [vmem:[#allocation5 + $0x130] sm:$0xff]   ;;  %v838_v15 = vld [vmem:[#allocation5 + $0x178] sm:$0xff]  }
  0x3e   :  { %721 = vmatpush3.bf16.msra.mxu0 %v805_v17  ;;  %v72_v1 = vadd.f32 %v71_v59, %v60_v58  ;;  %v839_v16 = vld [vmem:[#allocation5 + $0x138] sm:$0xff]   ;;  %v662_v17 = vcombine.low %v47_v63, %v50_v0 }
  0x3f   :  { %722 = vmatprep.subr.bf16.mxu0 %v808_v20  ;;  %v65_v61 = vadd.f32 %v64_v56, %v54_v55 }
  0x40   :  { %743 = vmatpush3.bf16.msra.mxu1 %v807_v19  ;;  %v73_v10 = vadd.f32 %v72_v1, %v61_v6  ;;  %v657_v19 = vld [vmem:[%s992_s2] ss:$0 sm:$0xff]  ;;  %s928_s2 = smov [#allocation7]  }
  0x41   :  { %744 = vmatprep.subr.bf16.mxu1 %v810_v22  ;;  %v66_v7 = vadd.f32 %v65_v61, %v55_v4  ;;  %s644_s16 = sshll.u32 %s928_s2, 4  ;;  %s645_s16 = int_to_ptr.vmem [resolvable:$true] %s644_s16 }
  0x42   :  { %723 = vmatpush3.bf16.msra.mxu0 %v809_v21  ;;  %v74_v13 = vadd.f32 %v73_v10, %v62_v8  ;;  %s893_s17 = scalar_lea.vmem %s645_s16, 256  ;;  %p898_p7 = scmp.lt.s32.totalorder %s645_s16, %s645_s16 }
  0x43   :  { %724 = vmatprep.subr.bf16.mxu0 %v812_v24  ;;  %v67_v12 = vadd.f32 %v66_v7, %v56_v5  ;;  %p894_p6 = scmp.ne.s32.totalorder %s645_s16, %s893_s17  ;;  %p899_p8 = scmp.lt.s32.totalorder %s893_s17, %s893_s17 }
  0x44   :  { %745 = vmatpush3.bf16.msra.mxu1 %v811_v23 }
  0x45   :  { %746 = vmatprep.subr.bf16.mxu1 %v814_v26  ;;  %68 = vadd.xlane.f32.xlu0 %v67_v12  ;;  %p900_p9 = por %p899_p8, %p898_p7 }
  0x46   :  { %725 = vmatpush3.bf16.msra.mxu0 %v813_v25 }
  0x47   :  { %726 = vmatprep.subr.bf16.mxu0 %v816_v28  ;;  %p901_p10 = pnand %p900_p9, %p894_p6 }
  0x48   :  { %747 = vmatpush3.bf16.msra.mxu1 %v815_v27 }
  0x49   :  { %748 = vmatprep.subr.bf16.mxu1 %v818_v30  ;;  %75 = vadd.xlane.f32.xlu0 %v74_v13 }
  0x4a   :  { %727 = vmatpush3.bf16.msra.mxu0 %v817_v29 }
  0x4b   :  { %756 = vmatprep.subr.bf16.mxu0 %v822_v36 }
  0x4c   :  { %749 = vmatpush3.bf16.msra.mxu1 %v820_v33 }
  0x4d   :  { %531 = vmatmul.mubr.bf16.vlgmr.msra.gmra.mrb[0].mxu0 %v658_v35 }
  0x4e   :  { %757 = vmatpush3.bf16.msra.mxu0 %v824_v40  ;;  %612 = vmatprep.mubr.bf16.mxu0 %v663_v3 }
  0x4f   :  { %572 = vmatmul.mubr.bf16.vlgmr.msra.gmra.mrb[0].mxu1 %v660_v41  ;;  %758 = vmatprep.subr.bf16.mxu0 %v826_v44 }
  0x52   :  { %759 = vmatpush3.bf16.msra.mxu0 %v827_v47 }
  0x53   :  { %760 = vmatprep.subr.bf16.mxu0 %v828_v48 }
  0x56   :  { %761 = vmatpush3.bf16.msra.mxu0 %v829_v52 }
  0x57   :  { %762 = vmatprep.subr.bf16.mxu0 %v830_v54 }
  0x5a   :  { %763 = vmatpush3.bf16.msra.mxu0 %v831_v57 }
  0x5b   :  { %764 = vmatprep.subr.bf16.mxu0 %v832_v60 }
  0x5e   :  { %765 = vmatpush3.bf16.msra.mxu0 %v833_v62 }
  0x5f   :  { %766 = vmatprep.subr.bf16.mxu0 %v834_v2 }
  0x62   :  { %767 = vmatpush3.bf16.msra.mxu0 %v835_v9 }
  0x63   :  { %768 = vmatprep.subr.bf16.mxu0 %v836_v11 }
  0x66   :  { %769 = vmatpush3.bf16.msra.mxu0 %v837_v14 }
  0x67   :  { %770 = vmatprep.subr.bf16.mxu0 %v838_v15 }
  0x6a   :  { %771 = vmatpush3.bf16.msra.mxu0 %v839_v16 }
  0x6d   :  { %613 = vmatmul.mubr.bf16.vlgmr.msra.gmra.mrb[4].mxu0 %v662_v17 }
  0xd2   :  { %v69_v35 = vpop.xlane.xlu0 %68 }
  0xd3   :  { %vm621_vm0 = vcmp.ne.f32.partialorder %v69_v35, 0.0 }
  0xd6   :  { %v76_v42 = vpop.xlane.xlu0 %75 }
  0xd7   :  { %vm622_vm1 = vcmp.ne.f32.partialorder %v76_v42, 0.0 }
 0x120   :  { %v728_v18 = vpop.f32.mrb[0].mxu0 }
 0x121   :  { %v729_v20 = vpop.f32.mrb[1].mxu0 }
 0x122   :  { %v730_v21 = vadd.f32 %v729_v20, %v728_v18  ;;  %v731_v22 = vpop.f32.mrb[2].mxu0  ;;  %v750_v23 = vpop.f32.mrb[0].mxu1 }
 0x123   :  { %v732_v24 = vpop.f32.mrb[3].mxu0  ;;  %v751_v25 = vpop.f32.mrb[1].mxu1 }
 0x124   :  { %v533_v26 = vadd.f32 %v730_v21, %v657_v19  ;;  %v733_v27 = vadd.f32 %v732_v24, %v731_v22  ;;  %v752_v28 = vadd.f32 %v751_v25, %v750_v23  ;;  %v753_v29 = vpop.f32.mrb[2].mxu1 }
 0x125   :  { %v754_v30 = vpop.f32.mrb[3].mxu1 }
 0x126   :  { %v536_v31 = vadd.f32 %v733_v27, %v657_v19  ;;  %v574_v32 = vadd.f32 %v752_v28, %v533_v26  ;;  %v755_v33 = vadd.f32 %v754_v30, %v753_v29 }
 0x128   :  { %v577_v34 = vadd.f32 %v755_v33, %v536_v31 }
 0x140   :  { %v772_v36 = vpop.f32.mrb[4].mxu0 }
 0x141   :  { %v773_v37 = vpop.f32.mrb[5].mxu0 }
 0x142   :  { %v774_v38 = vadd.f32 %v773_v37, %v772_v36  ;;  %v775_v39 = vpop.f32.mrb[6].mxu0 }
 0x143   :  { %v776_v40 = vpop.f32.mrb[7].mxu0 }
 0x144   :  { %v777_v41 = vadd.f32 %v776_v40, %v775_v39  ;;  %v615_v43 = vadd.f32 %v774_v38, %v574_v32 }
 0x146   :  { %v627_v44 = vsel %vm621_vm0, %v615_v43, 0.0  ;;  %v618_v45 = vadd.f32 %v777_v41, %v577_v34 }
 0x147   :  { %629 = vadd.xlane.f32.xlu1 %v627_v44 }
 0x148   :  { %v628_v46 = vsel %vm622_vm1, %v618_v45, 0.0 }
 0x14b   :  { %631 = vadd.xlane.f32.xlu1 %v628_v46 }
 0x1d4   :  { %v630_v47 = vpop.xlane.xlu1 %629 }
 0x1d5   :  { %842 = vrcp.f32 %v630_v47 }
 0x1d8   :  { %v632_v48 = vpop.xlane.xlu1 %631 }
 0x1d9   :  { %844 = vrcp.f32 %v632_v48 }
 0x1df   :  { %v843_v49 = vpop.eup %842 }
 0x1e0   :  { %v635_v50 = vmul.f32 %v843_v49, %v627_v44 }
 0x1e2   :  { %637 = vst [vmem:[#allocation7] sm:$0xff] %v635_v50 }
 0x1e3   :  { %v845_v51 = vpop.eup %844 }
 0x1e4   :  { %v636_v52 = vmul.f32 %v845_v51, %v628_v46 }
 0x1e6   :  { %638 = vst [vmem:[#allocation7 + $0x8] sm:$0xff] %v636_v52 }
 0x1e7   :  { %904 = shalt.err (!%p901_p10)
}
 0x1e8   :  { %s905_s20 = scalar_lea.hbm %s993_s3, 256 }
 0x1e9   :  { %p906_p11 = scmp.ne.s32.totalorder %s993_s3, %s905_s20  ;;  %p909_p12 = scmp.lt.u32.totalorder %s905_s20, %s993_s3 }
 0x1eb   :  { %p911_p13 = pnand %p909_p12, %p906_p11 }
 0x1ed   :  { %914 = shalt.err (!%p911_p13)
}
 0x1ee   :  { %s929_s25 = smov 128   ;;  %s930_s26 = smov 8  }
 0x1ef   :  { %650 = dma.vmem_to_hbm [thread:$0]  %s645_s16, 256, %s993_s3, [#allocation4], %s929_s25, %s929_s25, %s930_s26  }
 0x1f0   :  { %919 = dma.done.wait [#allocation4], 256  }
 0x1f1   :  { %920 = vsyncadd [#allocation4], 4294967040 }
 0x1f2   :  { %654 = vsyncpa [#allocation3], 1 }
 0x1f3   :  { %655 = vsyncpa [#allocation6], 1 }
 0x1f4   :  { %656 = vsyncpa [#allocation4], 1 }

</bundles_post_ra>
